<compile_context>
chip_gen: v6e
topology: v6e:2x2x1
jax: 0.10.0
libtpu: 0.0.40
codegen_flags: <defaults>
</compile_context>

<pallas_src>
import functools

import jax
import jax.numpy as jnp
from jax.experimental import pallas as pl
from jax.experimental.pallas import tpu as pltpu


def _gated_kernel(x_ref, cond_ref, w_ref, bias_ref, out_ref, halo_ref, *,
                  keep, pad, c_out, cp):
    # x_ref   : (1, C_in, TL)              current x tile (input dtype)
    # cond_ref: (1, E, TL)
    # w_ref   : (2*Cp, keep*C_in + E)      fused gate+condition weights (cdt)
    # bias_ref: (2*Cp, 1)                  fused condition-conv biases (f32)
    # out_ref : (1, C_out, TL)
    # halo_ref: (C_in, max(pad, 1))        carried causal left context (cdt)
    tl = out_ref.shape[2]
    cdt = w_ref.dtype

    xcurr = x_ref[0].astype(cdt)          # [C_in, TL]  (cast is a cheap VPU op)
    cond = cond_ref[0].astype(cdt)        # [E, TL]

    use_halo = keep > 0 and pad > 0
    if use_halo:
        j = pl.program_id(1)

        @pl.when(j == 0)
        def _():                          # first tile of a sequence: zero context
            halo_ref[...] = jnp.zeros_like(halo_ref)

        tail = halo_ref[...]              # [C_in, pad]

    # Fused RHS: every surviving causal tap (right-shifted x) stacked with cond.
    parts = []
    for k in range(keep):
        r = pad - k                       # right shift (>= 0 given K = 2P + 1)
        if r == 0:
            parts.append(xcurr)
        else:
            parts.append(jnp.concatenate(
                [tail[:, pad - r:], xcurr[:, :tl - r]], axis=-1))
    parts.append(cond)
    rhs = parts[0] if len(parts) == 1 else jnp.concatenate(parts, axis=0)

    if use_halo:                          # carry the last P samples to the next tile
        halo_ref[...] = xcurr[:, tl - pad:]

    # One MXU call; SSA accumulation in f32 (no VMEM accumulator round-trips).
    acc = (jnp.dot(w_ref[...], rhs, preferred_element_type=jnp.float32)
           + bias_ref[...])               # [2*Cp, TL]

    inp = jnp.tanh(acc[:c_out])
    # sigmoid(z) == 0.5 * (tanh(0.5 z) + 1): one EUP push instead of exp + rcp,
    # and the split at `cp` is sublane-aligned (Cp is a multiple of 8).
    gate = 0.5 * (jnp.tanh(0.5 * acc[cp:cp + c_out]) + 1.0)
    out_ref[0] = (inp * gate).astype(out_ref.dtype)


def _vmem_capacity_bytes():
    try:
        return int(pltpu.get_tpu_info().vmem_capacity_bytes)
    except Exception:
        return 64 * 1024 * 1024           # conservative fallback (v7x per-core)


def _pick_seq_tile(lp, c_in, e_dim, c_out, c_fused, kc, in_bytes, out_bytes,
                   cdt_bytes):
    """Largest 128-multiple tile dividing lp whose (double-buffered) working
    set fits a generation-aware VMEM budget."""
    cap = _vmem_capacity_bytes()
    budget = min(cap // 3, 56 * 1024 * 1024)

    def est(tl):
        x_buf = c_in * tl * in_bytes           # pipelined input tile
        cond_buf = e_dim * tl * in_bytes
        out_buf = c_out * tl * out_bytes
        w_buf = c_fused * kc * cdt_bytes + c_fused * 4   # fused weights + bias
        rhs = kc * tl * cdt_bytes                         # in-kernel fused RHS
        acc = c_fused * tl * 4                            # f32 matmul result
        return 2 * (x_buf + cond_buf + out_buf + w_buf) + rhs + acc

    for tl in (2048, 1024, 512, 256, 128):
        if lp % tl == 0 and est(tl) <= budget:
            return tl, est(tl), cap
    return 128, est(128), cap


def conditioned_gated_masked_conv1d(x, condition_embedding, params, *,
                                    mask_type, padding,
                                    compute_dtype=jnp.bfloat16):
    """x: [B, C_in, L]; condition_embedding: [B, E, L]  (PyTorch NCL layout).

    params:
      w1, w2   : [C_out, C_in, K]   masked conv weights (bias=False)
      cw1, cw2 : [C_out, E]         1x1 condition conv weights
      cb1, cb2 : [C_out]            1x1 condition conv biases
    Returns [B, C_out, L] in x.dtype.
    """
    assert mask_type in ("A", "B")
    B, C_in, L = x.shape
    E = condition_embedding.shape[1]
    C_out, _, K = params["w1"].shape
    P = padding
    assert L + 2 * P - K + 1 == L, "padding must preserve sequence length"

    keep = K // 2 + (1 if mask_type == "B" else 0)   # surviving causal taps
    cdt = jnp.dtype(compute_dtype) if compute_dtype is not None else x.dtype
    out_dtype = x.dtype

    # ---- host-side weight packing: both gates + condition conv -> one matrix.
    Cp = -(-C_out // 8) * 8                # sublane-align the gate split
    Kc = keep * C_in + E

    def pack_gate(w, cw):
        w = jnp.pad(w, ((0, Cp - C_out), (0, 0), (0, 0)))     # [Cp, C_in, K]
        cw = jnp.pad(cw, ((0, Cp - C_out), (0, 0)))           # [Cp, E]
        cols = [w[:, :, k] for k in range(keep)] + [cw]
        return jnp.concatenate(cols, axis=1)                  # [Cp, Kc]

    W = jnp.concatenate([pack_gate(params["w1"], params["cw1"]),
                         pack_gate(params["w2"], params["cw2"])],
                        axis=0).astype(cdt)                    # [2Cp, Kc]
    bias = jnp.concatenate([jnp.pad(params["cb1"], (0, Cp - C_out)),
                            jnp.pad(params["cb2"], (0, Cp - C_out))],
                           axis=0).reshape(2 * Cp, 1).astype(jnp.float32)

    # ---- inputs: right-pad only (to a 128 multiple); fuse the cast into that
    # pad when the compute dtype is narrower; zero copies when L % 128 == 0.
    Lp = max(-(-L // 128) * 128, 128)

    def prep(a):
        if Lp != L:
            if cdt.itemsize < a.dtype.itemsize:
                a = a.astype(cdt)          # fused with the pad by XLA
            a = jnp.pad(a, ((0, 0), (0, 0), (0, Lp - L)))
        return a

    X = prep(x)
    C = prep(condition_embedding)

    TL, vmem_est, vmem_cap = _pick_seq_tile(
        Lp, C_in, E, C_out, 2 * Cp, Kc,
        max(X.dtype.itemsize, C.dtype.itemsize),
        jnp.dtype(out_dtype).itemsize, cdt.itemsize)
    n_tiles = Lp // TL

    kernel = functools.partial(_gated_kernel, keep=keep, pad=P,
                               c_out=C_out, cp=Cp)

    # Generation-aware scoped-VMEM limit (v7x has only 64 MiB per TensorCore).
    vmem_limit = int(min(max(2 * vmem_est + (4 << 20), 32 << 20),
                         int(vmem_cap * 0.55)))

    out = pl.pallas_call(
        kernel,
        out_shape=jax.ShapeDtypeStruct((B, C_out, Lp), out_dtype),
        grid_spec=pltpu.PrefetchScalarGridSpec(
            num_scalar_prefetch=0,
            grid=(B, n_tiles),
            in_specs=[
                pl.BlockSpec((1, C_in, TL), lambda b, j: (b, 0, j)),
                pl.BlockSpec((1, E, TL), lambda b, j: (b, 0, j)),
                pl.BlockSpec((2 * Cp, Kc), lambda b, j: (0, 0)),
                pl.BlockSpec((2 * Cp, 1), lambda b, j: (0, 0)),
            ],
            out_specs=pl.BlockSpec((1, C_out, TL), lambda b, j: (b, 0, j)),
            scratch_shapes=[pltpu.VMEM((C_in, max(P, 1)), cdt)],  # halo carry
        ),
        # The tile axis carries the causal halo -> "arbitrary"; batch stays
        # "parallel" so v7x megacore can split it across TensorCores.
        # TODO(synk): when B == 1 on v7x, split L into two independent halves
        # (each with its own halo start) to keep both TensorCores busy.
        compiler_params=pltpu.CompilerParams(
            dimension_semantics=("parallel", "arbitrary"),
            vmem_limit_bytes=vmem_limit),
    )(X, C, W, bias)

    return out if Lp == L else out[:, :, :L]


def _reference(x, cond, params, *, mask_type, padding):
    """Pure-JAX reference mirroring the PyTorch forward."""
    B, C_in, L = x.shape
    C_out, _, K = params["w1"].shape
    keep = K // 2 + (1 if mask_type == "B" else 0)
    tap_mask = (jnp.arange(K) < keep).astype(x.dtype)
    w1m = params["w1"] * tap_mask[None, None, :]
    w2m = params["w2"] * tap_mask[None, None, :]

    x_pad = jnp.pad(x, ((0, 0), (0, 0), (padding, padding)))
    windows = jnp.stack([x_pad[:, :, k:k + L] for k in range(K)], axis=2)
    mc1 = jnp.einsum("bikl,oik->bol", windows, w1m)
    mc2 = jnp.einsum("bikl,oik->bol", windows, w2m)
    cc1 = jnp.einsum("bel,oe->bol", cond, params["cw1"]) + params["cb1"][None, :, None]
    cc2 = jnp.einsum("bel,oe->bol", cond, params["cw2"]) + params["cb2"][None, :, None]
    return jnp.tanh(mc1 + cc1) * jax.nn.sigmoid(mc2 + cc2)


if __name__ == "__main__":
    # Small shapes consistent with the module's forward:
    #   x: [B, C_in, L], condition_embedding: [B, E, L]
    B, C_in, C_out, L = 2, 4, 4, 16
    K, P = 3, 1
    E = 8

    key = jax.random.PRNGKey(0)
    k1, k2, k3, k4, k5, k6, kx, kc = jax.random.split(key, 8)
    params = {
        "w1": jax.random.normal(k1, (C_out, C_in, K), jnp.float32) * 0.1,
        "w2": jax.random.normal(k2, (C_out, C_in, K), jnp.float32) * 0.1,
        "cw1": jax.random.normal(k3, (C_out, E), jnp.float32) * 0.1,
        "cw2": jax.random.normal(k4, (C_out, E), jnp.float32) * 0.1,
        "cb1": jax.random.normal(k5, (C_out,), jnp.float32) * 0.1,
        "cb2": jax.random.normal(k6, (C_out,), jnp.float32) * 0.1,
    }
    x = jax.random.normal(kx, (B, C_in, L), jnp.float32)
    cond = jax.random.normal(kc, (B, E, L), jnp.float32)

    # --- f32 compute path, mask type 'B' (exact vs pure-JAX reference) ---
    fn_b = jax.jit(functools.partial(conditioned_gated_masked_conv1d,
                                     mask_type="B", padding=P,
                                     compute_dtype=jnp.float32))
    out_b = fn_b(x, cond, params)
    jax.block_until_ready(out_b)
    ref_b = _reference(x, cond, params, mask_type="B", padding=P)
    assert out_b.shape == (B, C_out, L)
    assert jnp.allclose(out_b, ref_b, atol=1e-5, rtol=1e-5), "mask B f32 mismatch"

    # --- f32 compute path, mask type 'A' (halo-only tap) ---
    fn_a = jax.jit(functools.partial(conditioned_gated_masked_conv1d,
                                     mask_type="A", padding=P,
                                     compute_dtype=jnp.float32))
    out_a = fn_a(x, cond, params)
    jax.block_until_ready(out_a)
    ref_a = _reference(x, cond, params, mask_type="A", padding=P)
    assert jnp.allclose(out_a, ref_a, atol=1e-5, rtol=1e-5), "mask A f32 mismatch"

    # --- default bf16 compute path (MXU-native everywhere), f32 accumulation ---
    fn_bf16 = jax.jit(functools.partial(conditioned_gated_masked_conv1d,
                                        mask_type="B", padding=P))
    out_bf16 = fn_bf16(x, cond, params)
    jax.block_until_ready(out_bf16)
    assert out_bf16.shape == (B, C_out, L)
    assert jnp.allclose(out_bf16, ref_b, atol=2e-2, rtol=2e-2), "bf16 mismatch"

    # --- multi-tile sequence: exercises the carried halo across tile bounds ---
    L2 = 384
    x2 = jax.random.normal(jax.random.PRNGKey(1), (B, C_in, L2), jnp.float32)
    cond2 = jax.random.normal(jax.random.PRNGKey(2), (B, E, L2), jnp.float32)
    fn_long = jax.jit(functools.partial(conditioned_gated_masked_conv1d,
                                        mask_type="B", padding=P,
                                        compute_dtype=jnp.float32))
    out2 = fn_long(x2, cond2, params)
    jax.block_until_ready(out2)
    ref2 = _reference(x2, cond2, params, mask_type="B", padding=P)
    assert jnp.allclose(out2, ref2, atol=1e-5, rtol=1e-5), "multi-tile halo mismatch"

    print("KERNEL_OK")
</pallas_src>

<mosaic_0001>
module attributes {stable_mosaic.version = 11 : i64} {
  func.func @_gated_kernel(%arg0: i32, %arg1: i32, %arg2: memref<1x4x128xf32, #tpu.memory_space<vmem>>, %arg3: memref<1x8x128xf32, #tpu.memory_space<vmem>>, %arg4: memref<16x16xf32, #tpu.memory_space<vmem>>, %arg5: memref<16x1xf32, #tpu.memory_space<vmem>>, %arg6: memref<1x4x128xf32, #tpu.memory_space<vmem>>, %arg7: memref<4x1xf32, #tpu.memory_space<vmem>>) attributes {dimension_semantics = [#tpu.dimension_semantics<parallel>, #tpu.dimension_semantics<arbitrary>], iteration_bounds = array<i64: 2, 1>, scalar_prefetch = 0 : i64, scratch_operands = 1 : i64, tpu.core_type = #tpu.core_type<tc>, window_params = [{transform_indices = @transform_0, window_bounds = array<i64: 1, 4, 128>}, {transform_indices = @transform_1, window_bounds = array<i64: 1, 8, 128>}, {pipeline_mode = #tpu.pipeline_mode<synchronous>, transform_indices = @transform_2, window_bounds = array<i64: 16, 16>}, {pipeline_mode = #tpu.pipeline_mode<synchronous>, transform_indices = @transform_3, window_bounds = array<i64: 16, 1>}, {transform_indices = @transform_4, window_bounds = array<i64: 1, 4, 128>}]} {
    %c0 = arith.constant 0 : index
    %c0_0 = arith.constant 0 : index
    %c0_1 = arith.constant 0 : index
    %0 = vector.load %arg2[%c0, %c0_0, %c0_1] : memref<1x4x128xf32, #tpu.memory_space<vmem>>, vector<1x4x128xf32>
    %1 = vector.shape_cast %0 : vector<1x4x128xf32> to vector<4x128xf32>
    %c0_2 = arith.constant 0 : index
    %c0_3 = arith.constant 0 : index
    %c0_4 = arith.constant 0 : index
    %2 = vector.load %arg3[%c0_2, %c0_3, %c0_4] : memref<1x8x128xf32, #tpu.memory_space<vmem>>, vector<1x8x128xf32>
    %3 = vector.shape_cast %2 : vector<1x8x128xf32> to vector<8x128xf32>
    %c0_i32 = arith.constant 0 : i32
    %4 = arith.cmpi eq, %arg1, %c0_i32 : i32
    %5 = arith.extui %4 : i1 to i32
    %c0_i32_5 = arith.constant 0 : i32
    %6 = arith.cmpi ne, %5, %c0_i32_5 : i32
    scf.if %6 {
      %cst_20 = arith.constant 0.000000e+00 : f32
      %32 = vector.broadcast %cst_20 : f32 to vector<4x1xf32>
      %c0_21 = arith.constant 0 : index
      %c0_22 = arith.constant 0 : index
      %33 = vector.load %arg7[%c0_21, %c0_22] : memref<4x1xf32, #tpu.memory_space<vmem>>, vector<4x1xf32>
      tpu.vector_store %arg7[%c0_21, %c0_22], %32 {strides = array<i32>} : memref<4x1xf32, #tpu.memory_space<vmem>>, vector<4x1xf32>,
    } else {
    }
    %c0_6 = arith.constant 0 : index
    %c0_7 = arith.constant 0 : index
    %7 = vector.load %arg7[%c0_6, %c0_7] : memref<4x1xf32, #tpu.memory_space<vmem>>, vector<4x1xf32>
    %8 = vector.extract_strided_slice %1 {offsets = [0, 0], sizes = [4, 127], strides = [1, 1]} : vector<4x128xf32> to vector<4x127xf32>
    %9 = tpu.concatenate %7, %8 in 1 : vector<4x1xf32>, vector<4x127xf32> -> vector<4x128xf32>
    %10 = tpu.concatenate %9, %1, %3 in 0 : vector<4x128xf32>, vector<4x128xf32>, vector<8x128xf32> -> vector<16x128xf32>
    %11 = vector.extract_strided_slice %1 {offsets = [0, 127], sizes = [4, 1], strides = [1, 1]} : vector<4x128xf32> to vector<4x1xf32>
    %c0_8 = arith.constant 0 : index
    %c0_9 = arith.constant 0 : index
    %12 = vector.load %arg7[%c0_8, %c0_9] : memref<4x1xf32, #tpu.memory_space<vmem>>, vector<4x1xf32>
    tpu.vector_store %arg7[%c0_8, %c0_9], %11 {strides = array<i32>} : memref<4x1xf32, #tpu.memory_space<vmem>>, vector<4x1xf32>,
    %c0_10 = arith.constant 0 : index
    %c0_11 = arith.constant 0 : index
    %13 = vector.load %arg4[%c0_10, %c0_11] : memref<16x16xf32, #tpu.memory_space<vmem>>, vector<16x16xf32>
    %cst = arith.constant dense<0.000000e+00> : vector<16x128xf32>
    %14 = tpu.matmul %13, %10, %cst {dimension_numbers = #tpu.dot_dimension_numbers<[1], [0], [0], [1], [0, 0, 1, 1], [], []>} : vector<16x16xf32>, vector<16x128xf32>, vector<16x128xf32> -> vector<16x128xf32>
    %c0_12 = arith.constant 0 : index
    %c0_13 = arith.constant 0 : index
    %15 = vector.load %arg5[%c0_12, %c0_13] : memref<16x1xf32, #tpu.memory_space<vmem>>, vector<16x1xf32>
    %16 = vector.broadcast %15 : vector<16x1xf32> to vector<16x128xf32>
    %17 = arith.addf %14, %16 : vector<16x128xf32>
    %18 = vector.extract_strided_slice %17 {offsets = [0, 0], sizes = [4, 128], strides = [1, 1]} : vector<16x128xf32> to vector<4x128xf32>
    %19 = math.tanh %18 : vector<4x128xf32>
    %20 = vector.extract_strided_slice %17 {offsets = [8, 0], sizes = [4, 128], strides = [1, 1]} : vector<16x128xf32> to vector<4x128xf32>
    %cst_14 = arith.constant 5.000000e-01 : f32
    %21 = vector.broadcast %cst_14 : f32 to vector<4x128xf32>
    %22 = arith.mulf %21, %20 : vector<4x128xf32>
    %23 = math.tanh %22 : vector<4x128xf32>
    %cst_15 = arith.constant 1.000000e+00 : f32
    %24 = vector.broadcast %cst_15 : f32 to vector<4x128xf32>
    %25 = arith.addf %23, %24 : vector<4x128xf32>
    %cst_16 = arith.constant 5.000000e-01 : f32
    %26 = vector.broadcast %cst_16 : f32 to vector<4x128xf32>
    %27 = arith.mulf %26, %25 : vector<4x128xf32>
    %28 = arith.mulf %19, %27 : vector<4x128xf32>
    %c0_17 = arith.constant 0 : index
    %c0_18 = arith.constant 0 : index
    %c0_19 = arith.constant 0 : index
    %29 = vector.load %arg6[%c0_17, %c0_18, %c0_19] : memref<1x4x128xf32, #tpu.memory_space<vmem>>, vector<1x4x128xf32>
    %30 = vector.shape_cast %29 : vector<1x4x128xf32> to vector<4x128xf32>
    %31 = vector.shape_cast %28 : vector<4x128xf32> to vector<1x4x128xf32>
    tpu.vector_store %arg6[%c0_17, %c0_18, %c0_19], %31 {strides = array<i32>} : memref<1x4x128xf32, #tpu.memory_space<vmem>>, vector<1x4x128xf32>,
    return
  }
  func.func @transform_0(%arg0: i32, %arg1: i32) -> (i32, i32, i32) {
    %c0_i32 = arith.constant 0 : i32
    %c0_i32_0 = arith.constant 0 : i32
    return %arg0, %c0_i32, %arg1 : i32, i32, i32
  }
  func.func @transform_1(%arg0: i32, %arg1: i32) -> (i32, i32, i32) {
    %c0_i32 = arith.constant 0 : i32
    %c0_i32_0 = arith.constant 0 : i32
    return %arg0, %c0_i32, %arg1 : i32, i32, i32
  }
  func.func @transform_2(%arg0: i32, %arg1: i32) -> (i32, i32) {
    %c0_i32 = arith.constant 0 : i32
    %c0_i32_0 = arith.constant 0 : i32
    %c0_i32_1 = arith.constant 0 : i32
    return %c0_i32, %c0_i32_0 : i32, i32
  }
  func.func @transform_3(%arg0: i32, %arg1: i32) -> (i32, i32) {
    %c0_i32 = arith.constant 0 : i32
    %c0_i32_0 = arith.constant 0 : i32
    %c0_i32_1 = arith.constant 0 : i32
    return %c0_i32, %c0_i32_0 : i32, i32
  }
  func.func @transform_4(%arg0: i32, %arg1: i32) -> (i32, i32, i32) {
    %c0_i32 = arith.constant 0 : i32
    %c0_i32_0 = arith.constant 0 : i32
    return %arg0, %c0_i32, %arg1 : i32, i32, i32
  }
}

</mosaic_0001>

<bundles_post_ra>
// kernel: conditioned_gated_masked_conv1d.1
= control target key start
LH: loop header
LB: loop body
LE: loop exit
PB: predicated region body
PF: predicated region fallthrough
CT: control target
= control target key end

     0   :  { %9 = vsyncpa [#allocation4], 0  ;;  %s785_s0 = inlined_call_operand.vmem [shape: f32[2,4,128], index: 0, kind: input, shape index: {}]   ;;  %s786_s1 = inlined_call_operand.vmem [shape: f32[2,8,128], index: 1, kind: input, shape index: {}]   ;;  %s787_s2 = inlined_call_operand.vmem [shape: f32[16,16], index: 2, kind: input, shape index: {}]   ;;  %s788_s3 = inlined_call_operand.vmem [shape: f32[16,1], index: 3, kind: input, shape index: {}]   ;;  %s789_s4 = inlined_call_operand.hbm [shape: f32[2,4,128], index: 4, kind: output, shape index: {}]  }
   0x1   :  { %11 = vsyncpa [#allocation4 + $0x1], 0  ;;  %s667_s15 = smov 0   ;;  %s669_s16 = smov 0  }
   0x2   :  { %s671_s17 = smov 0   ;;  %s673_s18 = smov 0  }
   0x3   :  { %s675_s19 = smov 0   ;;  %s677_s20 = smov 0  }
   0x4 LB: > { %s471_s21 = sadd.s32 4294967295, %s636_s20   ;;  %s472_s22 = sadd.s32 4294967294, %s636_s20   ;;  %s636_s20 = sphi %s677_s20, %s17_s20   ;;  %s632_s19 = sphi %s675_s19, %s796_s19   ;;  %s628_s18 = sphi %s673_s18, %s795_s18   ;;  %s624_s17 = sphi %s671_s17, %s794_s17   ;;  %s620_s16 = sphi %s669_s16, %s793_s16   ;;  %s616_s15 = sphi %s667_s15, %s792_s15  }
   0x5   : > { %s29_s23 = sadd.s32 1, %s632_s19  ;;  %s136_s24 = sadd.s32 1, %s624_s17 }
   0x6   : > { %p31_p0 = scmp.ge.s32.totalorder %s29_s23, 2  ;;  %p146_p1 = scmp.ne.s32.totalorder %s624_s17, %s620_s16 }
   0x7   : > { %p147_p2 = scmp.eq.s32.totalorder %s471_s21, 1  ;;  %p152_p3 = scmp.ne.s32.totalorder %s620_s16, %s616_s15 }
   0x8   : > { %s798_s23 = smov (%p31_p0, %s29_s23), 0  ;;  %p153_p5 = scmp.eq.s32.totalorder %s472_s22, 1 }
   0x9   : > { %p707_p4 = por %p147_p2, %p146_p1  ;;  %s131_s26 = ssub.s32 %s632_s19, %s798_s23 }
   0xa   : > { %p475_p6 = scmp.ge.s32.totalorder %s636_s20, 1  ;;  %p134_p7 = scmp.eq.s32.totalorder %s131_s26, 0 }
   0xb   : > { %p714_p8 = por %p153_p5, %p152_p3  ;;  %p197_p9 = scmp.lt.s32.totalorder %s636_s20, 3 }
   0xc   : > { %s720_s28 = scalar_select %p134_p7, %s624_s17, %s136_s24  }
   0xd   : > { %p198_p10 = pnand %p475_p6, %p197_p9 }
   0xe   : > { %p232_p11 = scmp.lt.s32.totalorder (!%p198_p10), %s628_s18, 1  ;;  %s640_s22 = smov (!%p198_p10), 1  }
   0xf   : > { %201 = sbr.rel (%p198_p10) target bundleno = 374 (0x176), region = 36  ;;  %s482_s7 = sshll.u32 (!%p198_p10), %s628_s18, 6 }
  0x14   : > { %vm252_vm0 = vcmask 3072   ;;  %v638_v0 = vmov 0.0   ;;  %v267_v1 = vld [vmem:[%s787_s2] sm:$0xff]  ;;  %vm281_vm1 = vcmask 130048   ;;  %s233_s5 = scalar_select %p232_p11, %s628_s18, 1  ;;  %v639_v2 = vmov 0  }
  0x15   : > { %253 = vst.msk [vmem:[#allocation2] sm:$0xf] %vm252_vm0, %v638_v0  ;;  %493 = vmatprep.mubr.msk.f32.mxu0 %vm281_vm1, %v267_v1  ;;  %554 = vset.pattern.permute.xlu0 %v639_v2  ;;  %v269_v3 = vld [vmem:[%s788_s3] sm:$0xff]  ;;  %v270_v6 = vld [vmem:[%s788_s3 + $0x8] sm:$0xff]  ;;  %vm259_vm2 = vcmask 7168   ;;  %vm263_vm3 = vcmask 1043456  }
  0x16   : > { %555 = vset.pattern.permute.xlu1 %v639_v2  ;;  %s477_s8 = sshll.u32 %s233_s5, 2  ;;  %s478_s9 = sshll.u32 %s233_s5, 3  ;;  %v268_v12 = vld [vmem:[%s787_s2 + $0x8] sm:$0xff] }
  0x17   : > { %273 = vperm.xlu1 %555, %v269_v3   ;;  %s238_s12 = scalar_lea.vmem %s785_s0, %s477_s8  ;;  %s245_s21 = scalar_lea.vmem %s786_s1, %s478_s9 }
  0x18   : > { %v246_v4 = vld [vmem:[%s238_s12] sm:$0xf]  ;;  %s229_s5 = sand.u32 1, %s620_s16   ;;  %s383_s12 = scalar_lea.hbm %s789_s4, %s482_s7 }
  0x19   : > { %v247_v5 = vld [vmem:[%s245_s21] sm:$0xff]  ;;  %256 = vrot.lane.b32.xlu0 %v246_v4, %s640_s22  ;;  %v261_v7 = vrot.slane %v246_v4, 4  ;;  %s476_s6 = sshll.u32 %s229_s5, 2  ;;  %s371_s13 = scalar_lea.sflag [#allocation4], %s229_s5 }
  0x1a   : > { %489 = vmatprep.subr.mxu0 %v247_v5  ;;  %s231_s8 = scalar_lea.vmem [#allocation3], %s476_s6  ;;  %s641_s21 = smov [#allocation3]  }
  0x1b   : > { %490 = vmatpush3.msra.mxu0 %v247_v5  ;;  %s385_s9 = sshll.u32 %s231_s8, 4  ;;  %s564_s22 = sshll.u32 %s641_s21, 4  ;;  %s386_s9 = int_to_ptr.vmem [resolvable:$true] %s385_s9  ;;  %s565_s22 = int_to_ptr.vmem [resolvable:$false] %s564_s22 }
  0x1c   : > { %v254_v8 = vld [vmem:[#allocation2] sm:$0xf]  ;;  %s560_s14 = scalar_lea.vmem %s386_s9, 64  ;;  %s566_s18 = scalar_lea.vmem %s565_s22, 128 }
  0x1d   : > { %278 = vperm.xlu0 %554, %v270_v6   ;;  %p561_p12 = scmp.ne.s32.totalorder %s386_s9, %s560_s14  ;;  %p567_p1 = scmp.lt.s32.totalorder %s386_s9, %s565_s22 }
  0x1e   : > { %p568_p2 = scmp.lt.s32.totalorder %s566_s18, %s560_s14 }
  0x1f   : > { %p562_p13 = pnand %p561_p12, %p707_p4 }
  0x20   : > { %p569_p3 = por %p568_p2, %p567_p1 }
  0x21   : > { %p563_p0 = pneg %p562_p13 }
  0x23   : > { %p570_p5 = pnand %p569_p3, %p563_p0 }
  0x8b   : > { %v257_v9 = vpop.permute.xlu0 %256 }
  0x8c   : > { %v260_v10 = vsel %vm259_vm2, %v254_v8, %v257_v9  ;;  %266 = vst.msk [vmem:[#allocation2] sm:$0xf] %vm252_vm0, %v257_v9 }
  0x8d   : > { %v264_v11 = vsel %vm263_vm3, %v260_v10, %v261_v7 }
  0x8e   : > { %491 = vmatprep.subr.mxu0 %v264_v11 }
  0x8f   : > { %492 = vmatpush3.msra.mxu0 %v264_v11 }
  0x90   : > { %494 = vmatmul.mubr.msk.f32.vlgmr.msra.gmra.mxu0 %vm281_vm1, %v268_v12 }
  0x92   : > { %v274_v16 = vpop.permute.xlu1 %273 }
  0x98   : > { %v279_v13 = vpop.permute.xlu0 %278 }
 0x150   : > { %v495_v14 = vpop.f32.mrf.mxu0 }
 0x151   : > { %v360_v15 = vadd.f32 %v495_v14, %v279_v13 }
 0x152   : > { %v354_v17 = vpop.f32.mrf.mxu0 }
 0x153   : > { %v364_v18 = vmul.f32 0.5, %v360_v15  ;;  %v355_v19 = vadd.f32 %v354_v17, %v274_v16 }
 0x155   : > { %556 = vtanh.f32 %v364_v18 }
 0x156   : > { %558 = vtanh.f32 %v355_v19 }
 0x162   : > { %v557_v20 = vpop.eup %556 }
 0x163   : > { %v366_v21 = vadd.f32 1.0, %v557_v20  ;;  %v559_v23 = vpop.eup %558 }
 0x165   : > { %v367_v22 = vmul.f32 0.5, %v366_v21 }
 0x167   : > { %v368_v24 = vmul.f32 %v559_v23, %v367_v22 }
 0x169   : > { %369 = vst [vmem:[%s231_s8] sm:$0xf] %v368_v24 }
 0x16a   : > { %573 = shalt.err (!%p570_p5)
}
 0x16b   : > { %s574_s24 = scalar_lea.hbm %s383_s12, 64  ;;  %s578_s30 = scalar_lea.hbm %s789_s4, 128 }
 0x16c   : > { %p575_p6 = scmp.ne.s32.totalorder %s383_s12, %s574_s24  ;;  %p579_p10 = scmp.lt.s32.totalorder %s383_s12, %s789_s4 }
 0x16d   : > { %p580_p11 = scmp.lt.s32.totalorder %s578_s30, %s574_s24 }
 0x16e   : > { %p576_p7 = pnand %p575_p6, %p707_p4 }
 0x16f   : > { %p581_p12 = por %p580_p11, %p579_p10 }
 0x170   : > { %p577_p9 = pneg %p576_p7 }
 0x172   : > { %p582_p13 = pnand %p581_p12, %p577_p9 }
 0x174   : > { %585 = shalt.err (!%p582_p13)
}
 0x175   : > { %496 = dma.vmem_to_hbm [thread:$0]  (%p707_p4), %s386_s9, 64, %s383_s12, %s371_s13  }
 0x176 PF: > { %p502_p0 = scmp.ge.s32.totalorder %s636_s20, 2  ;;  %s397_s7 = sand.u32 1, %s616_s15  }
 0x177   : > { %s398_s8 = scalar_lea.sflag [#allocation4], %s397_s7 }
 0x178   : > { %p499_p1 = pnand %p502_p0, %p714_p8 }
 0x17a   : > { %p500_p2 = pneg %p499_p1 }
 0x17c   : > { %611 = dma.done.wait (%p500_p2), %s398_s8, 64  }
 0x17d   : > { %613 = vsyncadd (%p500_p2), %s398_s8, 4294967232  ;;  %s17_s20 = sadd.s32 1, %s636_s20   ;;  %s792_s15 = smov %s620_s16 }
 0x17e   : > { %p14_p3 = scmp.ge.s32.totalorder %s17_s20, 4   ;;  %s793_s16 = smov %s624_s17 }
 0x17f   : > { %s794_s17 = smov %s720_s28  ;;  %s795_s18 = smov %s632_s19 }
 0x180   : > { %s796_s19 = smov %s798_s23  ;;  %16 = sbr.rel (!%p14_p3) target bundleno = 4 (0x4), region = 78 }
 0x185   :  { %403 = vsyncpa [#allocation4], 1 }
 0x186   :  { %405 = vsyncpa [#allocation4 + $0x1], 1 }

</bundles_post_ra>
